<compile_context>
chip_gen: v6e
topology: v6e:2x2x1
jax: 0.10.0
libtpu: 0.0.40
codegen_flags: <defaults>
</compile_context>

<pallas_src>
import jax
import jax.numpy as jnp
from jax import lax
from jax.experimental import pallas as pl
from jax.experimental.pallas import tpu as pltpu


def _sigmoid(x):
    return 1.0 / (1.0 + jnp.exp(-x))


def _dot_kernel(mix_ref, q_ref, out_ref):
    # mix_ref: (1, tn, H)   q_ref: (1, 1, H)   out_ref: (1, 1, tn)
    mix = mix_ref[0]                                                   # (tn, H)
    q = q_ref[0]                                                       # (1, H)
    # Contract over H with N landing on the lane axis -> lane-dense (1, tn) result.
    e = lax.dot_general(q, mix, (((1,), (1,)), ((), ())),
                        preferred_element_type=jnp.float32)            # (1, tn)
    out_ref[0] = _sigmoid(e).astype(out_ref.dtype)


def _align_kernel(mix_ref, q2_ref, w1_ref, w3_ref, out_ref):
    # mix_ref: (1, tn, H)  q2_ref: (1, 1, A)  w1: (H, A)  w3: (1, A)  out: (1, 1, tn)
    mix = mix_ref[0]                                                   # (tn, H)
    m1 = jnp.dot(mix, w1_ref[...],
                 preferred_element_type=jnp.float32)                   # (tn, A)
    s = jnp.tanh(m1 + q2_ref[0].astype(jnp.float32))                   # (tn, A)
    # (1, A) x (tn, A) contracted over A -> lane-dense (1, tn) energy row.
    e = lax.dot_general(w3_ref[...].astype(jnp.float32), s,
                        (((1,), (1,)), ((), ())),
                        preferred_element_type=jnp.float32)            # (1, tn)
    out_ref[0] = _sigmoid(e).astype(out_ref.dtype)


def _pick_tile_n(n, max_tile=1024):
    # Output lane dim must be a multiple of 128 (or the full extent). Tile size is
    # tiny VMEM-wise (tn * H * dtype_bytes, double-buffered), safe on v5e/v6e/v7x.
    if n % 128 == 0:
        return min(max_tile, n)
    return n  # fall back to a full-N block when N isn't lane-aligned


def attention_forward(mix_hidden, query, params=None, mode="dot"):
    """mix_hidden: (B, T, F, H); query: (B, Q). Returns mask (B, T, F)."""
    B, T, F, H = mix_hidden.shape
    N = T * F
    mix = mix_hidden.reshape(B, N, H)            # keep original dtype (bf16-friendly)
    out_dtype = mix_hidden.dtype
    tn = _pick_tile_n(N)
    grid = (B, pl.cdiv(N, tn))
    cparams = pltpu.CompilerParams(
        dimension_semantics=("parallel", "parallel"))

    if mode == "dot":
        assert query.shape == (B, H), "dot mode requires query_size == hidden_size"
        q = query.reshape(B, 1, H)
        out = pl.pallas_call(
            _dot_kernel,
            out_shape=jax.ShapeDtypeStruct((B, 1, N), out_dtype),
            grid_spec=pltpu.PrefetchScalarGridSpec(
                num_scalar_prefetch=0,
                grid=grid,
                in_specs=[
                    pl.BlockSpec((1, tn, H), lambda b, n: (b, n, 0)),
                    pl.BlockSpec((1, 1, H), lambda b, n: (b, 0, 0)),
                ],
                out_specs=pl.BlockSpec((1, 1, tn), lambda b, n: (b, 0, n)),
            ),
            compiler_params=cparams,
        )(mix, q)
        return out.reshape(B, T, F)

    elif mode == "align":
        w1t = params["w1t"]       # (H, A)  == Linear_1.weight.T
        w2t = params["w2t"]       # (Q, A)  == Linear_2.weight.T
        w3r = params["w3_row"]    # (1, A)  == Linear_3.weight (already a row)
        A = w1t.shape[-1]
        # Hoist Linear_2(query): one batched matmul in the wrapper, reused by all tiles.
        q2 = jnp.dot(query, w2t).reshape(B, 1, A)
        out = pl.pallas_call(
            _align_kernel,
            out_shape=jax.ShapeDtypeStruct((B, 1, N), out_dtype),
            grid_spec=pltpu.PrefetchScalarGridSpec(
                num_scalar_prefetch=0,
                grid=grid,
                in_specs=[
                    pl.BlockSpec((1, tn, H), lambda b, n: (b, n, 0)),
                    pl.BlockSpec((1, 1, A), lambda b, n: (b, 0, 0)),
                    pl.BlockSpec((H, A), lambda b, n: (0, 0)),
                    pl.BlockSpec((1, A), lambda b, n: (0, 0)),
                ],
                out_specs=pl.BlockSpec((1, 1, tn), lambda b, n: (b, 0, n)),
            ),
            compiler_params=cparams,
        )(mix, q2, w1t, w3r)
        return out.reshape(B, T, F)

    else:
        raise IndexError("NO this attention methods.")


if __name__ == "__main__":
    key = jax.random.PRNGKey(0)
    B, T, F = 2, 8, 16
    hidden_size = 32
    query_size = 32          # dot mode requires query_size == hidden_size
    align_hidden_size = 32

    k1, k2, k3, k4, k5 = jax.random.split(key, 5)
    mix_hidden = jax.random.normal(k1, (B, T, F, hidden_size), jnp.float32)
    query = jax.random.normal(k2, (B, query_size), jnp.float32)

    # Deterministic nn.Linear-style weights (PyTorch stores (out_features, in_features)).
    scale = 1.0 / jnp.sqrt(jnp.float32(hidden_size))
    w1 = jax.random.uniform(k3, (align_hidden_size, hidden_size), jnp.float32, -scale, scale)
    w2 = jax.random.uniform(k4, (align_hidden_size, query_size), jnp.float32, -scale, scale)
    w3 = jax.random.uniform(k5, (1, align_hidden_size), jnp.float32, -scale, scale)
    params = {"w1t": w1.T, "w2t": w2.T, "w3_row": w3}

    # ---- 'dot' mode: sigmoid(bmm(mix, query)) ----
    mask_dot = attention_forward(mix_hidden, query, params, mode="dot")
    jax.block_until_ready(mask_dot)
    ref_dot = jax.nn.sigmoid(jnp.einsum("btfh,bh->btf", mix_hidden, query))
    assert mask_dot.shape == (B, T, F)
    assert jnp.allclose(mask_dot, ref_dot, atol=1e-4, rtol=1e-4)

    # ---- 'align' mode: sigmoid(Linear_3(tanh(Linear_1(mix) + Linear_2(query)))) ----
    mask_al = attention_forward(mix_hidden, query, params, mode="align")
    jax.block_until_ready(mask_al)
    m1 = jnp.einsum("btfh,ah->btfa", mix_hidden, w1)
    q2 = jnp.einsum("bq,aq->ba", query, w2)[:, None, None, :]
    s = jnp.tanh(m1 + q2)
    ref_al = jax.nn.sigmoid(jnp.einsum("btfa,oa->btfo", s, w3)[..., 0])
    assert mask_al.shape == (B, T, F)
    assert jnp.allclose(mask_al, ref_al, atol=1e-4, rtol=1e-4)

    print("KERNEL_OK")
</pallas_src>

<mosaic_0001>
module attributes {stable_mosaic.version = 11 : i64} {
  func.func @_dot_kernel(%arg0: i32, %arg1: i32, %arg2: memref<1x128x32xf32, #tpu.memory_space<vmem>>, %arg3: memref<1x1x32xf32, #tpu.memory_space<vmem>>, %arg4: memref<1x1x128xf32, #tpu.memory_space<vmem>>) attributes {dimension_semantics = [#tpu.dimension_semantics<parallel>, #tpu.dimension_semantics<parallel>], iteration_bounds = array<i64: 2, 1>, scalar_prefetch = 0 : i64, scratch_operands = 0 : i64, tpu.core_type = #tpu.core_type<tc>, window_params = [{transform_indices = @transform_0, window_bounds = array<i64: 1, 128, 32>}, {transform_indices = @transform_1, window_bounds = array<i64: 1, 1, 32>}, {transform_indices = @transform_2, window_bounds = array<i64: 1, 1, 128>}]} {
    %c0 = arith.constant 0 : index
    %c0_0 = arith.constant 0 : index
    %c0_1 = arith.constant 0 : index
    %0 = vector.load %arg2[%c0, %c0_0, %c0_1] : memref<1x128x32xf32, #tpu.memory_space<vmem>>, vector<1x128x32xf32>
    %1 = vector.shape_cast %0 : vector<1x128x32xf32> to vector<128x32xf32>
    %c0_2 = arith.constant 0 : index
    %c0_3 = arith.constant 0 : index
    %c0_4 = arith.constant 0 : index
    %2 = vector.load %arg3[%c0_2, %c0_3, %c0_4] : memref<1x1x32xf32, #tpu.memory_space<vmem>>, vector<1x1x32xf32>
    %3 = vector.shape_cast %2 : vector<1x1x32xf32> to vector<1x32xf32>
    %cst = arith.constant dense<0.000000e+00> : vector<1x128xf32>
    %4 = tpu.matmul %3, %1, %cst {dimension_numbers = #tpu.dot_dimension_numbers<[1], [1], [0], [0], [0, 0, 1, 0], [], []>} : vector<1x32xf32>, vector<128x32xf32>, vector<1x128xf32> -> vector<1x128xf32>
    %cst_5 = arith.constant 0.000000e+00 : f32
    %5 = vector.broadcast %cst_5 : f32 to vector<1x128xf32>
    %6 = arith.subf %5, %4 : vector<1x128xf32>
    %7 = math.exp %6 : vector<1x128xf32>
    %cst_6 = arith.constant 1.000000e+00 : f32
    %8 = vector.broadcast %cst_6 : f32 to vector<1x128xf32>
    %9 = arith.addf %8, %7 : vector<1x128xf32>
    %cst_7 = arith.constant 1.000000e+00 : f32
    %10 = vector.broadcast %cst_7 : f32 to vector<1x128xf32>
    %11 = arith.divf %10, %9 : vector<1x128xf32>
    %c0_8 = arith.constant 0 : index
    %c0_9 = arith.constant 0 : index
    %c0_10 = arith.constant 0 : index
    %12 = vector.load %arg4[%c0_8, %c0_9, %c0_10] : memref<1x1x128xf32, #tpu.memory_space<vmem>>, vector<1x1x128xf32>
    %13 = vector.shape_cast %12 : vector<1x1x128xf32> to vector<1x128xf32>
    %14 = vector.shape_cast %11 : vector<1x128xf32> to vector<1x1x128xf32>
    tpu.vector_store %arg4[%c0_8, %c0_9, %c0_10], %14 {strides = array<i32>} : memref<1x1x128xf32, #tpu.memory_space<vmem>>, vector<1x1x128xf32>,
    return
  }
  func.func @transform_0(%arg0: i32, %arg1: i32) -> (i32, i32, i32) {
    %c0_i32 = arith.constant 0 : i32
    %c0_i32_0 = arith.constant 0 : i32
    return %arg0, %arg1, %c0_i32 : i32, i32, i32
  }
  func.func @transform_1(%arg0: i32, %arg1: i32) -> (i32, i32, i32) {
    %c0_i32 = arith.constant 0 : i32
    %c0_i32_0 = arith.constant 0 : i32
    %c0_i32_1 = arith.constant 0 : i32
    return %arg0, %c0_i32, %c0_i32_0 : i32, i32, i32
  }
  func.func @transform_2(%arg0: i32, %arg1: i32) -> (i32, i32, i32) {
    %c0_i32 = arith.constant 0 : i32
    %c0_i32_0 = arith.constant 0 : i32
    return %arg0, %c0_i32, %arg1 : i32, i32, i32
  }
}

</mosaic_0001>

<bundles_post_ra>
// kernel: tpu_custom_call.1
= control target key start
LH: loop header
LB: loop body
LE: loop exit
PB: predicated region body
PF: predicated region fallthrough
CT: control target
= control target key end

     0   :  { %7 = vsyncpa [#allocation3], 0  ;;  %s808_s0 = inlined_call_operand.vmem [shape: f32[2,128,32], index: 0, kind: input, shape index: {}]   ;;  %s809_s1 = inlined_call_operand.vmem [shape: f32[2,1,32], index: 1, kind: input, shape index: {}]   ;;  %s810_s2 = inlined_call_operand.hbm [shape: f32[2,1,128], index: 2, kind: output, shape index: {}]  }
   0x1   :  { %9 = vsyncpa [#allocation3 + $0x1], 0  ;;  %s661_s9 = smov 0   ;;  %s663_s10 = smov 0  }
   0x2   :  { %s665_s11 = smov 0   ;;  %s667_s12 = smov 0  }
   0x3   :  { %s669_s13 = smov 0   ;;  %s671_s14 = smov 0  }
   0x4 LB: > { %s424_s15 = sadd.s32 4294967295, %s641_s14   ;;  %s425_s16 = sadd.s32 4294967294, %s641_s14   ;;  %s641_s14 = sphi %s671_s14, %s15_s14   ;;  %s637_s13 = sphi %s669_s13, %s817_s13   ;;  %s633_s12 = sphi %s667_s12, %s816_s12   ;;  %s629_s11 = sphi %s665_s11, %s815_s11   ;;  %s625_s10 = sphi %s663_s10, %s814_s10   ;;  %s621_s9 = sphi %s661_s9, %s813_s9  }
   0x5   : > { %s27_s17 = sadd.s32 1, %s637_s13  ;;  %s90_s18 = sadd.s32 1, %s629_s11 }
   0x6   : > { %p29_p0 = scmp.ge.s32.totalorder %s27_s17, 2  ;;  %p100_p1 = scmp.ne.s32.totalorder %s629_s11, %s625_s10 }
   0x7   : > { %p101_p2 = scmp.eq.s32.totalorder %s424_s15, 1  ;;  %p106_p3 = scmp.ne.s32.totalorder %s625_s10, %s621_s9 }
   0x8   : > { %s819_s17 = smov (%p29_p0, %s27_s17), 0  ;;  %p107_p5 = scmp.eq.s32.totalorder %s425_s16, 1 }
   0x9   : > { %p701_p4 = por %p101_p2, %p100_p1  ;;  %s85_s20 = ssub.s32 %s637_s13, %s819_s17 }
   0xa   : > { %p428_p6 = scmp.ge.s32.totalorder %s641_s14, 1  ;;  %p88_p7 = scmp.eq.s32.totalorder %s85_s20, 0 }
   0xb   : > { %p708_p8 = por %p107_p5, %p106_p3  ;;  %p144_p9 = scmp.lt.s32.totalorder %s641_s14, 3 }
   0xc   : > { %s714_s22 = scalar_select %p88_p7, %s629_s11, %s90_s18  }
   0xd   : > { %p145_p10 = pnand %p428_p6, %p144_p9 }
   0xe   : > { %p173_p11 = scmp.lt.s32.totalorder (!%p145_p10), %s633_s12, 1  ;;  %s170_s3 = sand.u32 (!%p145_p10), 1, %s625_s10  }
   0xf   : > { %148 = sbr.rel (%p145_p10) target bundleno = 328 (0x148), region = 28  ;;  %s448_s4 = sshll.u32 (!%p145_p10), %s633_s12, 4 }
  0x10   : > { %s171_s5 = scalar_lea.vmem (!%p145_p10), [#allocation2], %s170_s3  ;;  %s768_s15 = scalar_lea.hbm (!%p145_p10), %s810_s2, %s448_s4 }
  0x11   : > { %s345_s6 = sshll.u32 (!%p145_p10), %s171_s5, 4  ;;  %s332_s16 = scalar_lea.sflag (!%p145_p10), [#allocation3], %s170_s3  ;;  %s346_s6 = int_to_ptr.vmem [resolvable:$true] %s345_s6 }
  0x12   : > { %s565_s18 = scalar_lea.vmem (!%p145_p10), %s346_s6, 16  ;;  %s645_s20 = smov (!%p145_p10), [#allocation2]  }
  0x13   : > { %p566_p12 = scmp.ne.s32.totalorder (!%p145_p10), %s346_s6, %s565_s18 }
  0x14   : > { %v643_v0 = vmov 0.0   ;;  %vm644_vm0 = vmmov 0   ;;  %s718_s23 = scalar_select %p173_p11, %s633_s12, 1  ;;  %vm202_vm1 = vcmask 261120  }
  0x15   : > { %469 = vmatprep.subr.mxu0 %v643_v0  ;;  %501 = vmatprep.mubr.msk.f32.mxu0 %vm644_vm0, %v643_v0  ;;  %p567_p13 = pnand %p566_p12, %p701_p4 }
  0x16   : > { %s451_s24 = sshll.u32 %s718_s23, 7  ;;  %s184_s30 = scalar_lea.vmem %s809_s1, %s718_s23 }
  0x17   : > { %s724_s27 = scalar_lea.vmem %s808_s0, %s451_s24  ;;  %v201_v17 = vld [vmem:[%s184_s30] sm:$0x1]  ;;  %p568_p0 = pneg %p567_p13 }
  0x18   : > { %v200_v1 = vld [vmem:[%s724_s27 + $0x78] sm:$0xff]  ;;  %v199_v2 = vld [vmem:[%s724_s27 + $0x70] sm:$0xff]  ;;  %v198_v3 = vld [vmem:[%s724_s27 + $0x68] sm:$0xff]  ;;  %s569_s23 = sshll.u32 %s645_s20, 4  ;;  %s570_s23 = int_to_ptr.vmem [resolvable:$false] %s569_s23 }
  0x19   : > { %470 = vmatpush3.xpose.msk.msra.mxu0 %vm202_vm1, %v200_v1  ;;  %v197_v4 = vld [vmem:[%s724_s27 + $0x60] sm:$0xff]  ;;  %v196_v5 = vld [vmem:[%s724_s27 + $0x58] sm:$0xff]  ;;  %v195_v6 = vld [vmem:[%s724_s27 + $0x50] sm:$0xff]  ;;  %s571_s12 = scalar_lea.vmem %s570_s23, 32  ;;  %p572_p1 = scmp.lt.s32.totalorder %s346_s6, %s570_s23 }
  0x1a   : > { %471 = vmatprep.subr.mxu0 %v643_v0  ;;  %v194_v7 = vld [vmem:[%s724_s27 + $0x48] sm:$0xff]  ;;  %v193_v8 = vld [vmem:[%s724_s27 + $0x40] sm:$0xff]  ;;  %v192_v9 = vld [vmem:[%s724_s27 + $0x38] sm:$0xff]  ;;  %p573_p2 = scmp.lt.s32.totalorder %s571_s12, %s565_s18 }
  0x1b   : > { %v191_v10 = vld [vmem:[%s724_s27 + $0x30] sm:$0xff]  ;;  %v190_v11 = vld [vmem:[%s724_s27 + $0x28] sm:$0xff]  ;;  %v189_v12 = vld [vmem:[%s724_s27 + $0x20] sm:$0xff] }
  0x1c   : > { %v188_v13 = vld [vmem:[%s724_s27 + $0x18] sm:$0xff]  ;;  %v187_v14 = vld [vmem:[%s724_s27 + $0x10] sm:$0xff]  ;;  %v186_v15 = vld [vmem:[%s724_s27 + $0x8] sm:$0xff]  ;;  %p574_p3 = por %p573_p2, %p572_p1 }
  0x1d   : > { %472 = vmatpush3.xpose.msk.msra.mxu0 %vm202_vm1, %v199_v2  ;;  %v185_v16 = vld [vmem:[%s724_s27] sm:$0xff] }
  0x1e   : > { %473 = vmatprep.subr.mxu0 %v643_v0  ;;  %p575_p5 = pnand %p574_p3, %p568_p0 }
  0x21   : > { %474 = vmatpush3.xpose.msk.msra.mxu0 %vm202_vm1, %v198_v3 }
  0x22   : > { %475 = vmatprep.subr.mxu0 %v643_v0 }
  0x25   : > { %476 = vmatpush3.xpose.msk.msra.mxu0 %vm202_vm1, %v197_v4 }
  0x26   : > { %477 = vmatprep.subr.mxu0 %v643_v0 }
  0x29   : > { %478 = vmatpush3.xpose.msk.msra.mxu0 %vm202_vm1, %v196_v5 }
  0x2a   : > { %479 = vmatprep.subr.mxu0 %v643_v0 }
  0x2d   : > { %480 = vmatpush3.xpose.msk.msra.mxu0 %vm202_vm1, %v195_v6 }
  0x2e   : > { %481 = vmatprep.subr.mxu0 %v643_v0 }
  0x31   : > { %482 = vmatpush3.xpose.msk.msra.mxu0 %vm202_vm1, %v194_v7 }
  0x32   : > { %483 = vmatprep.subr.mxu0 %v643_v0 }
  0x35   : > { %484 = vmatpush3.xpose.msk.msra.mxu0 %vm202_vm1, %v193_v8 }
  0x36   : > { %485 = vmatprep.subr.mxu0 %v643_v0 }
  0x39   : > { %486 = vmatpush3.xpose.msk.msra.mxu0 %vm202_vm1, %v192_v9 }
  0x3a   : > { %487 = vmatprep.subr.mxu0 %v643_v0 }
  0x3d   : > { %488 = vmatpush3.xpose.msk.msra.mxu0 %vm202_vm1, %v191_v10 }
  0x3e   : > { %489 = vmatprep.subr.mxu0 %v643_v0 }
  0x41   : > { %490 = vmatpush3.xpose.msk.msra.mxu0 %vm202_vm1, %v190_v11 }
  0x42   : > { %491 = vmatprep.subr.mxu0 %v643_v0 }
  0x45   : > { %492 = vmatpush3.xpose.msk.msra.mxu0 %vm202_vm1, %v189_v12 }
  0x46   : > { %493 = vmatprep.subr.mxu0 %v643_v0 }
  0x49   : > { %494 = vmatpush3.xpose.msk.msra.mxu0 %vm202_vm1, %v188_v13 }
  0x4a   : > { %495 = vmatprep.subr.mxu0 %v643_v0 }
  0x4d   : > { %496 = vmatpush3.xpose.msk.msra.mxu0 %vm202_vm1, %v187_v14 }
  0x4e   : > { %497 = vmatprep.subr.mxu0 %v643_v0 }
  0x51   : > { %498 = vmatpush3.xpose.msk.msra.mxu0 %vm202_vm1, %v186_v15 }
  0x52   : > { %499 = vmatprep.subr.mxu0 %v643_v0 }
  0x55   : > { %500 = vmatpush3.xpose.msk.msra.mxu0 %vm202_vm1, %v185_v16 }
  0x58   : > { %502 = vmatmul.mubr.msk.f32.vlgmr.msra.gmra.mxu0 %vm202_vm1, %v201_v17 }
 0x118   : > { %v320_v18 = vpop.f32.mrf.mxu0 }
 0x119   : > { %v324_v19 = vsub.f32 0.0, %v320_v18 }
 0x11a   : > { %v503_v20 = vpop.f32.mrf.mxu0 }
 0x11b   : > { %v325_v21 = vmul.f32 1.442695, %v324_v19 }
 0x11d   : > { %561 = vpow2.f32 %v325_v21 }
 0x12a   : > { %v562_v22 = vpop.eup %561 }
 0x12b   : > { %v327_v23 = vadd.f32 1.0, %v562_v22 }
 0x12d   : > { %563 = vrcp.f32 %v327_v23 }
 0x13a   : > { %v564_v24 = vpop.eup %563 }
 0x13b   : > { %330 = vst [vmem:[%s171_s5] sm:$0x1] %v564_v24 }
 0x13c   : > { %578 = shalt.err (!%p575_p5)
}
 0x13d   : > { %s579_s24 = scalar_lea.hbm %s768_s15, 16  ;;  %s583_s27 = scalar_lea.hbm %s810_s2, 32 }
 0x13e   : > { %p580_p6 = scmp.ne.s32.totalorder %s768_s15, %s579_s24  ;;  %p584_p10 = scmp.lt.s32.totalorder %s768_s15, %s810_s2 }
 0x13f   : > { %p585_p11 = scmp.lt.s32.totalorder %s583_s27, %s579_s24 }
 0x140   : > { %p581_p7 = pnand %p580_p6, %p701_p4 }
 0x141   : > { %p586_p12 = por %p585_p11, %p584_p10 }
 0x142   : > { %p582_p9 = pneg %p581_p7 }
 0x144   : > { %p587_p13 = pnand %p586_p12, %p582_p9 }
 0x146   : > { %590 = shalt.err (!%p587_p13)
}
 0x147   : > { %504 = dma.vmem_to_hbm [thread:$0]  (%p701_p4), %s346_s6, 16, %s768_s15, %s332_s16  }
 0x148 PF: > { %p510_p0 = scmp.ge.s32.totalorder %s641_s14, 2  ;;  %s357_s30 = sand.u32 1, %s621_s9  }
 0x149   : > { %s358_s3 = scalar_lea.sflag [#allocation3], %s357_s30 }
 0x14a   : > { %p507_p1 = pnand %p510_p0, %p708_p8 }
 0x14c   : > { %p508_p2 = pneg %p507_p1 }
 0x14e   : > { %616 = dma.done.wait (%p508_p2), %s358_s3, 16  }
 0x14f   : > { %618 = vsyncadd (%p508_p2), %s358_s3, 4294967280  ;;  %s15_s14 = sadd.s32 1, %s641_s14   ;;  %s813_s9 = smov %s625_s10 }
 0x150   : > { %p12_p3 = scmp.ge.s32.totalorder %s15_s14, 4   ;;  %s814_s10 = smov %s629_s11 }
 0x151   : > { %s815_s11 = smov %s714_s22  ;;  %s816_s12 = smov %s637_s13 }
 0x152   : > { %s817_s13 = smov %s819_s17  ;;  %14 = sbr.rel (!%p12_p3) target bundleno = 4 (0x4), region = 66 }
 0x157   :  { %362 = vsyncpa [#allocation3], 1 }
 0x158   :  { %364 = vsyncpa [#allocation3 + $0x1], 1 }

</bundles_post_ra>
